<compile_context>
chip_gen: v7x
topology: tpu7x:2x2x1
jax: 0.10.0
libtpu: 0.0.40
codegen_flags: <defaults>
</compile_context>

<pallas_src>
import functools
import math

import jax
import jax.numpy as jnp
from jax.experimental import pallas as pl
from jax.experimental.pallas import tpu as pltpu

_LANE = 128


def _round_up(v, m):
    return (v + m - 1) // m * m


def _focal_loss_kernel(x_ref, t_ref, o_ref, acc_ref, *,
                       num_classes, gamma, alpha_vals, valid_s,
                       rows_tile, tiles_per_part, need_mask):
    """One (part p, row-tile s) grid step.

    x_ref  : (1, C, rows_tile, 128) logits  — dense spatial planes per class
    t_ref  : (1, 1, rows_tile, 128) int32 targets
    o_ref  : (1, 8, 128)            per-part partial sum (written at last s)
    acc_ref: (rows_tile, 128) f32   per-position running partial sums
    """
    p = pl.program_id(0)
    s = pl.program_id(1)

    @pl.when(s == 0)
    def _():
        acc_ref[...] = jnp.zeros_like(acc_ref)

    t = t_ref[0, 0]                                   # (rows_tile, 128) int32

    # --- numerically stable log-softmax, unrolled over class planes --------
    m = x_ref[0, 0].astype(jnp.float32)
    for c in range(1, num_classes):
        m = jnp.maximum(m, x_ref[0, c].astype(jnp.float32))

    sumexp = None
    z_t = None                                        # gathered (x_t - max)
    for c in range(num_classes):
        z = x_ref[0, c].astype(jnp.float32) - m
        e = jnp.exp(z)
        sumexp = e if sumexp is None else sumexp + e
        sel = t == c
        if z_t is None:
            z_t = jnp.where(sel, z, 0.0)
        else:
            z_t = jnp.where(sel, z, z_t)

    logpt = z_t - jnp.log(sumexp)                     # log p_target
    pt = jnp.exp(logpt)                               # EUP; == torch logpt.exp()

    # --- optional alpha weighting (static per-class constants) -------------
    if alpha_vals is not None:
        at = jnp.full_like(logpt, alpha_vals[0])
        for c in range(1, num_classes):
            at = jnp.where(t == c, alpha_vals[c], at)
        logpt = logpt * at

    # --- focal weight -------------------------------------------------------
    g = float(gamma)
    gi = int(g)
    if g == 0.0:
        loss = -logpt
    elif g == gi and 0 < gi <= 16:
        base = 1.0 - pt
        w = base
        for _ in range(gi - 1):
            w = w * base
        loss = -w * logpt
    else:
        loss = -((1.0 - pt) ** g) * logpt

    # --- mask invalid positions (ragged / padded / duplicated tiles) -------
    if need_mask:
        g_tile = p * tiles_per_part + s if tiles_per_part else s
        row0 = g_tile * rows_tile
        rid = jax.lax.broadcasted_iota(jnp.int32, loss.shape, 0)
        lid = jax.lax.broadcasted_iota(jnp.int32, loss.shape, 1)
        pos = (row0 + rid) * _LANE + lid
        loss = jnp.where(pos < valid_s, loss, 0.0)

    acc_ref[...] += loss

    @pl.when(s == pl.num_programs(1) - 1)
    def _():
        total = jnp.sum(acc_ref[...])
        o_ref[...] = jnp.broadcast_to(total, o_ref.shape).astype(o_ref.dtype)


def focal_loss(logits, target, *, gamma=0.0, alpha=None, size_average=True,
               target_tile_bytes=8 << 20):
    """Pallas FocalLoss forward.

    logits: (M, C) or (N, C, *spatial) float array
    target: integer class ids, (M,) or (N, *spatial)
    alpha : None | float | list — as in the torch module
    """
    x = jnp.asarray(logits)
    if x.ndim > 2:
        N, C = int(x.shape[0]), int(x.shape[1])
        S = int(math.prod(x.shape[2:]))
        x3 = x.reshape(N, C, S)                       # free reshape, no transpose
        t3 = jnp.asarray(target).reshape(N, 1, S).astype(jnp.int32)
    else:
        M, C = int(x.shape[0]), int(x.shape[1])
        N, S = 1, M
        # TODO(synk): an (M, C)-native kernel variant would avoid this
        # transpose (one extra HBM pass); negligible for deepke's small
        # sentence-level relation logits.
        x3 = x.T.reshape(1, C, S)
        t3 = jnp.asarray(target).reshape(1, 1, S).astype(jnp.int32)

    # alpha -> static per-class constants baked into the kernel.
    if alpha is None:
        alpha_vals = None
    else:
        if isinstance(alpha, (float, int)):
            avec = [float(alpha), 1.0 - float(alpha)]
        else:
            avec = [float(a) for a in list(alpha)]
        if len(avec) < C:
            raise ValueError(
                f"alpha table has {len(avec)} entries but input has {C} "
                f"classes (torch's alpha.gather would fail here too).")
        alpha_vals = tuple(avec[:C])

    # Lane-align the spatial axis.  Pads (one HBM copy) ONLY when S % 128 != 0.
    S_pad = _round_up(S, _LANE)
    if S_pad != S:
        x3 = jnp.pad(x3, ((0, 0), (0, 0), (0, S_pad - S)))
        t3 = jnp.pad(t3, ((0, 0), (0, 0), (0, S_pad - S)))
    R = S_pad // _LANE
    x4 = x3.reshape(N, C, R, _LANE)                   # free reshape
    t4 = t3.reshape(N, 1, R, _LANE)

    # Row-tile: ~target_tile_bytes of logits per grid step (native dtype),
    # sublane-aligned, capped so double-buffered inputs + f32 temporaries stay
    # well inside the 48 MiB VMEM limit below (sized for v7x's 64 MiB VMEM).
    rows = target_tile_bytes // (x4.dtype.itemsize * C * _LANE)
    rows = min(max(8, (rows // 8) * 8), 4096)
    rows_tile = R if rows >= R else rows
    num_tiles = -(-R // rows_tile)

    # Parallel grid axis of extent >= 2 whenever possible (v7x: 2 TensorCores):
    # batch when N > 1, otherwise split the row tiles into two halves.
    split = (N == 1) and (num_tiles >= 2)
    if split:
        tiles_per_part = -(-num_tiles // 2)
        grid = (2, tiles_per_part)
        last_tile = num_tiles - 1

        def in_map(p_, s_):
            # Duplicated tail tiles are clamped onto the last real tile (never
            # a fully out-of-bounds DMA); the kernel masks them to zero using
            # the *unclamped* logical position.
            return (0, 0, jnp.minimum(p_ * tiles_per_part + s_, last_tile), 0)

        out_map = lambda p_, s_: (p_, 0, 0)
        P = 2
    else:
        tiles_per_part = 0
        grid = (N, num_tiles)
        in_map = lambda n_, s_: (n_, 0, s_, 0)
        out_map = lambda n_, s_: (n_, 0, 0)
        P = N

    # Static: do we need the per-position validity mask at all?
    need_mask = (S != R * _LANE) or (R % rows_tile != 0) or \
                (split and num_tiles % 2 != 0)

    kernel = functools.partial(
        _focal_loss_kernel,
        num_classes=C,
        gamma=float(gamma),
        alpha_vals=alpha_vals,
        valid_s=int(S),
        rows_tile=int(rows_tile),
        tiles_per_part=int(tiles_per_part),
        need_mask=bool(need_mask),
    )

    out = pl.pallas_call(
        kernel,
        out_shape=jax.ShapeDtypeStruct((P, 8, _LANE), jnp.float32),
        grid_spec=pltpu.PrefetchScalarGridSpec(
            num_scalar_prefetch=0,
            grid=grid,
            in_specs=[
                # logits: class planes, dense (rows_tile, 128) spatial tiles
                pl.BlockSpec((1, C, rows_tile, _LANE), in_map),
                # targets: one dense int32 plane
                pl.BlockSpec((1, 1, rows_tile, _LANE), in_map),
            ],
            out_specs=pl.BlockSpec((1, 8, _LANE), out_map),
            scratch_shapes=[pltpu.VMEM((rows_tile, _LANE), jnp.float32)],
        ),
        compiler_params=pltpu.CompilerParams(
            dimension_semantics=("parallel", "arbitrary"),
            vmem_limit_bytes=48 * 1024 * 1024,
        ),
    )(x4, t4)

    total = jnp.sum(out[:, 0, 0])
    if size_average:
        return total / float(N * S)
    return total


def _focal_loss_ref(logits, target, *, gamma=0.0, alpha=None,
                    size_average=True):
    """Pure-JAX reference mirroring the torch module."""
    x = jnp.asarray(logits)
    if x.ndim > 2:
        n, c = x.shape[0], x.shape[1]
        x = x.reshape(n, c, -1).transpose(0, 2, 1).reshape(-1, c)
    t = jnp.asarray(target).reshape(-1).astype(jnp.int32)
    logp = jax.nn.log_softmax(x.astype(jnp.float32), axis=1)
    logpt = jnp.take_along_axis(logp, t[:, None], axis=1)[:, 0]
    pt = jnp.exp(logpt)
    if alpha is not None:
        if isinstance(alpha, (float, int)):
            a = jnp.array([alpha, 1.0 - alpha], jnp.float32)
        else:
            a = jnp.asarray(alpha, jnp.float32)
        logpt = logpt * a[t]
    loss = -1.0 * (1.0 - pt) ** gamma * logpt
    return loss.mean() if size_average else loss.sum()


if __name__ == "__main__":
    key = jax.random.PRNGKey(0)
    k1, k2, k3, k4, k5, k6 = jax.random.split(key, 6)

    # 1) NCHW conv-style logits: batch=2, classes=4, spatial=16x16.
    N, C, H, W = 2, 4, 16, 16
    logits = jax.random.normal(k1, (N, C, H, W), dtype=jnp.float32)
    target = jax.random.randint(k2, (N, H, W), 0, C, dtype=jnp.int32)
    gamma, alpha = 2.0, [0.1, 0.2, 0.3, 0.4]
    out = jax.block_until_ready(
        focal_loss(logits, target, gamma=gamma, alpha=alpha,
                   size_average=True))
    ref = _focal_loss_ref(logits, target, gamma=gamma, alpha=alpha,
                          size_average=True)
    assert jnp.allclose(out, ref, rtol=1e-5, atol=1e-5), (out, ref)

    # 2) Flat (M, C) classification: gamma=0, no alpha, sum reduction.
    M2, C2 = 8, 5
    logits2 = jax.random.normal(k3, (M2, C2), dtype=jnp.float32)
    target2 = jax.random.randint(k4, (M2,), 0, C2, dtype=jnp.int32)
    out2 = jax.block_until_ready(
        focal_loss(logits2, target2, gamma=0.0, alpha=None,
                   size_average=False))
    ref2 = _focal_loss_ref(logits2, target2, gamma=0.0, alpha=None,
                           size_average=False)
    assert jnp.allclose(out2, ref2, rtol=1e-5, atol=1e-5), (out2, ref2)

    # 3) N == 1 with several row tiles: exercises the split parallel axis,
    #    the ragged last tile and the clamped duplicate-tile masking.
    #    (tiny target_tile_bytes forces rows_tile=8 -> 3 tiles -> grid (2, 2))
    N3, C3, H3, W3 = 1, 3, 48, 48
    logits3 = jax.random.normal(k5, (N3, C3, H3, W3), dtype=jnp.float32)
    target3 = jax.random.randint(k6, (N3, H3, W3), 0, C3, dtype=jnp.int32)
    out3 = jax.block_until_ready(
        focal_loss(logits3, target3, gamma=3.0, alpha=[0.2, 0.3, 0.5],
                   size_average=True, target_tile_bytes=8 * C3 * 128 * 4))
    ref3 = _focal_loss_ref(logits3, target3, gamma=3.0, alpha=[0.2, 0.3, 0.5],
                           size_average=True)
    assert jnp.allclose(out3, ref3, rtol=1e-5, atol=1e-5), (out3, ref3)

    print("KERNEL_OK")
</pallas_src>

<mosaic_0001>
module attributes {stable_mosaic.version = 11 : i64} {
  func.func @_focal_loss_kernel(%arg0: i32, %arg1: i32, %arg2: memref<1x4x2x128xf32, #tpu.memory_space<vmem>>, %arg3: memref<1x1x2x128xi32, #tpu.memory_space<vmem>>, %arg4: memref<1x8x128xf32, #tpu.memory_space<vmem>>, %arg5: memref<2x128xf32, #tpu.memory_space<vmem>>) attributes {dimension_semantics = [#tpu.dimension_semantics<parallel>, #tpu.dimension_semantics<arbitrary>], iteration_bounds = array<i64: 2, 1>, scalar_prefetch = 0 : i64, scratch_operands = 1 : i64, tpu.core_type = #tpu.core_type<tc>, window_params = [{transform_indices = @transform_0, window_bounds = array<i64: 1, 4, 2, 128>}, {transform_indices = @transform_1, window_bounds = array<i64: 1, 1, 2, 128>}, {transform_indices = @transform_2, window_bounds = array<i64: 1, 8, 128>}]} {
    %c0_i32 = arith.constant 0 : i32
    %0 = arith.cmpi eq, %arg1, %c0_i32 : i32
    %1 = arith.extui %0 : i1 to i32
    %c0_i32_0 = arith.constant 0 : i32
    %2 = arith.cmpi ne, %1, %c0_i32_0 : i32
    scf.if %2 {
      %cst_49 = arith.constant 0.000000e+00 : f32
      %77 = vector.broadcast %cst_49 : f32 to vector<2x128xf32>
      %c0_50 = arith.constant 0 : index
      %c0_51 = arith.constant 0 : index
      %78 = vector.load %arg5[%c0_50, %c0_51] : memref<2x128xf32, #tpu.memory_space<vmem>>, vector<2x128xf32>
      tpu.vector_store %arg5[%c0_50, %c0_51], %77 {strides = array<i32>} : memref<2x128xf32, #tpu.memory_space<vmem>>, vector<2x128xf32>,
    } else {
    }
    %c0 = arith.constant 0 : index
    %c0_1 = arith.constant 0 : index
    %c0_2 = arith.constant 0 : index
    %c0_3 = arith.constant 0 : index
    %3 = vector.load %arg3[%c0, %c0_1, %c0_2, %c0_3] : memref<1x1x2x128xi32, #tpu.memory_space<vmem>>, vector<1x1x2x128xi32>
    %4 = vector.shape_cast %3 : vector<1x1x2x128xi32> to vector<2x128xi32>
    %c0_4 = arith.constant 0 : index
    %c0_5 = arith.constant 0 : index
    %c0_6 = arith.constant 0 : index
    %c0_7 = arith.constant 0 : index
    %5 = vector.load %arg2[%c0_4, %c0_5, %c0_6, %c0_7] : memref<1x4x2x128xf32, #tpu.memory_space<vmem>>, vector<1x1x2x128xf32>
    %6 = vector.shape_cast %5 : vector<1x1x2x128xf32> to vector<2x128xf32>
    %c0_8 = arith.constant 0 : index
    %c1 = arith.constant 1 : index
    %c0_9 = arith.constant 0 : index
    %c0_10 = arith.constant 0 : index
    %7 = vector.load %arg2[%c0_8, %c1, %c0_9, %c0_10] : memref<1x4x2x128xf32, #tpu.memory_space<vmem>>, vector<1x1x2x128xf32>
    %8 = vector.shape_cast %7 : vector<1x1x2x128xf32> to vector<2x128xf32>
    %9 = arith.maximumf %6, %8 : vector<2x128xf32>
    %c0_11 = arith.constant 0 : index
    %c2 = arith.constant 2 : index
    %c0_12 = arith.constant 0 : index
    %c0_13 = arith.constant 0 : index
    %10 = vector.load %arg2[%c0_11, %c2, %c0_12, %c0_13] : memref<1x4x2x128xf32, #tpu.memory_space<vmem>>, vector<1x1x2x128xf32>
    %11 = vector.shape_cast %10 : vector<1x1x2x128xf32> to vector<2x128xf32>
    %12 = arith.maximumf %9, %11 : vector<2x128xf32>
    %c0_14 = arith.constant 0 : index
    %c3 = arith.constant 3 : index
    %c0_15 = arith.constant 0 : index
    %c0_16 = arith.constant 0 : index
    %13 = vector.load %arg2[%c0_14, %c3, %c0_15, %c0_16] : memref<1x4x2x128xf32, #tpu.memory_space<vmem>>, vector<1x1x2x128xf32>
    %14 = vector.shape_cast %13 : vector<1x1x2x128xf32> to vector<2x128xf32>
    %15 = arith.maximumf %12, %14 : vector<2x128xf32>
    %c0_17 = arith.constant 0 : index
    %c0_18 = arith.constant 0 : index
    %c0_19 = arith.constant 0 : index
    %c0_20 = arith.constant 0 : index
    %16 = vector.load %arg2[%c0_17, %c0_18, %c0_19, %c0_20] : memref<1x4x2x128xf32, #tpu.memory_space<vmem>>, vector<1x1x2x128xf32>
    %17 = vector.shape_cast %16 : vector<1x1x2x128xf32> to vector<2x128xf32>
    %18 = arith.subf %17, %15 : vector<2x128xf32>
    %19 = math.exp %18 : vector<2x128xf32>
    %c0_i32_21 = arith.constant 0 : i32
    %20 = vector.broadcast %c0_i32_21 : i32 to vector<2x128xi32>
    %21 = arith.cmpi eq, %4, %20 : vector<2x128xi32>
    %cst = arith.constant 0.000000e+00 : f32
    %22 = vector.broadcast %cst : f32 to vector<2x128xf32>
    %23 = arith.select %21, %18, %22 : vector<2x128xi1>, vector<2x128xf32>
    %c0_22 = arith.constant 0 : index
    %c1_23 = arith.constant 1 : index
    %c0_24 = arith.constant 0 : index
    %c0_25 = arith.constant 0 : index
    %24 = vector.load %arg2[%c0_22, %c1_23, %c0_24, %c0_25] : memref<1x4x2x128xf32, #tpu.memory_space<vmem>>, vector<1x1x2x128xf32>
    %25 = vector.shape_cast %24 : vector<1x1x2x128xf32> to vector<2x128xf32>
    %26 = arith.subf %25, %15 : vector<2x128xf32>
    %27 = math.exp %26 : vector<2x128xf32>
    %28 = arith.addf %19, %27 : vector<2x128xf32>
    %c1_i32 = arith.constant 1 : i32
    %29 = vector.broadcast %c1_i32 : i32 to vector<2x128xi32>
    %30 = arith.cmpi eq, %4, %29 : vector<2x128xi32>
    %31 = arith.select %30, %26, %23 : vector<2x128xi1>, vector<2x128xf32>
    %c0_26 = arith.constant 0 : index
    %c2_27 = arith.constant 2 : index
    %c0_28 = arith.constant 0 : index
    %c0_29 = arith.constant 0 : index
    %32 = vector.load %arg2[%c0_26, %c2_27, %c0_28, %c0_29] : memref<1x4x2x128xf32, #tpu.memory_space<vmem>>, vector<1x1x2x128xf32>
    %33 = vector.shape_cast %32 : vector<1x1x2x128xf32> to vector<2x128xf32>
    %34 = arith.subf %33, %15 : vector<2x128xf32>
    %35 = math.exp %34 : vector<2x128xf32>
    %36 = arith.addf %28, %35 : vector<2x128xf32>
    %c2_i32 = arith.constant 2 : i32
    %37 = vector.broadcast %c2_i32 : i32 to vector<2x128xi32>
    %38 = arith.cmpi eq, %4, %37 : vector<2x128xi32>
    %39 = arith.select %38, %34, %31 : vector<2x128xi1>, vector<2x128xf32>
    %c0_30 = arith.constant 0 : index
    %c3_31 = arith.constant 3 : index
    %c0_32 = arith.constant 0 : index
    %c0_33 = arith.constant 0 : index
    %40 = vector.load %arg2[%c0_30, %c3_31, %c0_32, %c0_33] : memref<1x4x2x128xf32, #tpu.memory_space<vmem>>, vector<1x1x2x128xf32>
    %41 = vector.shape_cast %40 : vector<1x1x2x128xf32> to vector<2x128xf32>
    %42 = arith.subf %41, %15 : vector<2x128xf32>
    %43 = math.exp %42 : vector<2x128xf32>
    %44 = arith.addf %36, %43 : vector<2x128xf32>
    %c3_i32 = arith.constant 3 : i32
    %45 = vector.broadcast %c3_i32 : i32 to vector<2x128xi32>
    %46 = arith.cmpi eq, %4, %45 : vector<2x128xi32>
    %47 = arith.select %46, %42, %39 : vector<2x128xi1>, vector<2x128xf32>
    %48 = math.log %44 : vector<2x128xf32>
    %49 = arith.subf %47, %48 : vector<2x128xf32>
    %50 = math.exp %49 : vector<2x128xf32>
    %cst_34 = arith.constant 1.000000e-01 : f32
    %51 = vector.broadcast %cst_34 : f32 to vector<2x128xf32>
    %c1_i32_35 = arith.constant 1 : i32
    %52 = vector.broadcast %c1_i32_35 : i32 to vector<2x128xi32>
    %53 = arith.cmpi eq, %4, %52 : vector<2x128xi32>
    %cst_36 = arith.constant 2.000000e-01 : f32
    %54 = vector.broadcast %cst_36 : f32 to vector<2x128xf32>
    %55 = arith.select %53, %54, %51 : vector<2x128xi1>, vector<2x128xf32>
    %c2_i32_37 = arith.constant 2 : i32
    %56 = vector.broadcast %c2_i32_37 : i32 to vector<2x128xi32>
    %57 = arith.cmpi eq, %4, %56 : vector<2x128xi32>
    %cst_38 = arith.constant 3.000000e-01 : f32
    %58 = vector.broadcast %cst_38 : f32 to vector<2x128xf32>
    %59 = arith.select %57, %58, %55 : vector<2x128xi1>, vector<2x128xf32>
    %c3_i32_39 = arith.constant 3 : i32
    %60 = vector.broadcast %c3_i32_39 : i32 to vector<2x128xi32>
    %61 = arith.cmpi eq, %4, %60 : vector<2x128xi32>
    %cst_40 = arith.constant 4.000000e-01 : f32
    %62 = vector.broadcast %cst_40 : f32 to vector<2x128xf32>
    %63 = arith.select %61, %62, %59 : vector<2x128xi1>, vector<2x128xf32>
    %64 = arith.mulf %49, %63 : vector<2x128xf32>
    %cst_41 = arith.constant 1.000000e+00 : f32
    %65 = vector.broadcast %cst_41 : f32 to vector<2x128xf32>
    %66 = arith.subf %65, %50 : vector<2x128xf32>
    %67 = arith.mulf %66, %66 : vector<2x128xf32>
    %cst_42 = arith.constant 0.000000e+00 : f32
    %68 = vector.broadcast %cst_42 : f32 to vector<2x128xf32>
    %69 = arith.subf %68, %67 : vector<2x128xf32>
    %70 = arith.mulf %69, %64 : vector<2x128xf32>
    %c0_43 = arith.constant 0 : index
    %c0_44 = arith.constant 0 : index
    %71 = vector.load %arg5[%c0_43, %c0_44] : memref<2x128xf32, #tpu.memory_space<vmem>>, vector<2x128xf32>
    %72 = arith.addf %71, %70 : vector<2x128xf32>
    %c0_45 = arith.constant 0 : index
    %c0_46 = arith.constant 0 : index
    %73 = vector.load %arg5[%c0_45, %c0_46] : memref<2x128xf32, #tpu.memory_space<vmem>>, vector<2x128xf32>
    tpu.vector_store %arg5[%c0_45, %c0_46], %72 {strides = array<i32>} : memref<2x128xf32, #tpu.memory_space<vmem>>, vector<2x128xf32>,
    %c0_i32_47 = arith.constant 0 : i32
    %74 = arith.cmpi eq, %arg1, %c0_i32_47 : i32
    %75 = arith.extui %74 : i1 to i32
    %c0_i32_48 = arith.constant 0 : i32
    %76 = arith.cmpi ne, %75, %c0_i32_48 : i32
    scf.if %76 {
      %c0_49 = arith.constant 0 : index
      %c0_50 = arith.constant 0 : index
      %77 = vector.load %arg5[%c0_49, %c0_50] : memref<2x128xf32, #tpu.memory_space<vmem>>, vector<2x128xf32>
      %78 = vector.shape_cast %77 : vector<2x128xf32> to vector<1x2x128xf32>
      %cst_51 = arith.constant dense<0.000000e+00> : vector<1xf32>
      %79 = vector.multi_reduction <add>, %78, %cst_51 [1, 2] : vector<1x2x128xf32> to vector<1xf32>
      %80 = vector.shape_cast %79 : vector<1xf32> to vector<1x1x1xf32>
      %81 = vector.extract %80[0, 0, 0] : f32 from vector<1x1x1xf32>
      %82 = vector.broadcast %81 : f32 to vector<1x8x128xf32>
      %c0_52 = arith.constant 0 : index
      %c0_53 = arith.constant 0 : index
      %c0_54 = arith.constant 0 : index
      %83 = vector.load %arg4[%c0_52, %c0_53, %c0_54] : memref<1x8x128xf32, #tpu.memory_space<vmem>>, vector<1x8x128xf32>
      tpu.vector_store %arg4[%c0_52, %c0_53, %c0_54], %82 {strides = array<i32>} : memref<1x8x128xf32, #tpu.memory_space<vmem>>, vector<1x8x128xf32>,
    } else {
    }
    return
  }
  func.func @transform_0(%arg0: i32, %arg1: i32) -> (i32, i32, i32, i32) {
    %c0_i32 = arith.constant 0 : i32
    %c0_i32_0 = arith.constant 0 : i32
    %c0_i32_1 = arith.constant 0 : i32
    return %arg0, %c0_i32, %arg1, %c0_i32_0 : i32, i32, i32, i32
  }
  func.func @transform_1(%arg0: i32, %arg1: i32) -> (i32, i32, i32, i32) {
    %c0_i32 = arith.constant 0 : i32
    %c0_i32_0 = arith.constant 0 : i32
    %c0_i32_1 = arith.constant 0 : i32
    return %arg0, %c0_i32, %arg1, %c0_i32_0 : i32, i32, i32, i32
  }
  func.func @transform_2(%arg0: i32, %arg1: i32) -> (i32, i32, i32) {
    %c0_i32 = arith.constant 0 : i32
    %c0_i32_0 = arith.constant 0 : i32
    %c0_i32_1 = arith.constant 0 : i32
    return %arg0, %c0_i32, %c0_i32_0 : i32, i32, i32
  }
}

</mosaic_0001>

<bundles_post_ra>
// kernel: tpu_custom_call.1
= control target key start
LH: loop header
LB: loop body
LE: loop exit
PB: predicated region body
PF: predicated region fallthrough
CT: control target
= control target key end

     0   :  { %7 = vsyncpa [#allocation4], 0  ;;  %s902_s0 = inlined_call_operand.hbm [shape: f32[2,4,2,128], index: 0, kind: input, shape index: {}]   ;;  %s903_s1 = inlined_call_operand.hbm [shape: s32[2,1,2,128], index: 1, kind: input, shape index: {}]   ;;  %s904_s2 = inlined_call_operand.hbm [shape: f32[2,8,128], index: 2, kind: output, shape index: {}]  }
   0x1   :  { %9 = vsyncpa [#allocation4 + $0x1], 0 }
   0x2   :  { %10 = vsyncpa [#allocation7], 0 }
   0x3   :  { %12 = vsyncpa [#allocation7 + $0x1], 0 }
   0x4   :  { %13 = vsyncpa [#allocation5], 0 }
   0x5   :  { %15 = vsyncpa [#allocation5 + $0x1], 0  ;;  %s683_s9 = smov 0   ;;  %s685_s10 = smov 0  }
   0x6   :  { %s687_s11 = smov 0   ;;  %s689_s12 = smov 0  }
   0x7   :  { %s691_s13 = smov 0   ;;  %s693_s14 = smov 0  }
   0x8 LB: > { %s407_s15 = sadd.s32 4294967295, %s659_s14   ;;  %s408_s16 = sadd.s32 4294967294, %s659_s14   ;;  %s659_s14 = sphi %s693_s14, %s21_s14   ;;  %s655_s13 = sphi %s691_s13, %s923_s13   ;;  %s651_s12 = sphi %s689_s12, %s922_s12   ;;  %s647_s11 = sphi %s687_s11, %s921_s11   ;;  %s643_s10 = sphi %s685_s10, %s920_s10   ;;  %s639_s9 = sphi %s683_s9, %s919_s9  }
   0x9   : > { %s33_s17 = sadd.s32 1, %s655_s13  ;;  %s42_s18 = sadd.s32 1, %s647_s11 }
   0xa   : > { %p35_p0 = scmp.ge.s32.totalorder %s33_s17, 2  ;;  %p49_p1 = scmp.ne.s32.totalorder %s647_s11, %s643_s10 }
   0xb   : > { %p50_p2 = scmp.eq.s32.totalorder %s659_s14, 0  ;;  %p55_p3 = scmp.ne.s32.totalorder %s643_s10, %s639_s9 }
   0xc   : > { %s925_s17 = smov (%p35_p0, %s33_s17), 0  ;;  %p56_p5 = scmp.eq.s32.totalorder %s407_s15, 0 }
   0xd   : > { %p724_p4 = por %p50_p2, %p49_p1  ;;  %s37_s20 = ssub.s32 %s655_s13, %s925_s17 }
   0xe   : > { %p107_p6 = scmp.eq.s32.totalorder %s407_s15, 1  ;;  %p40_p7 = scmp.eq.s32.totalorder %s37_s20, 0 }
   0xf   : > { %p730_p8 = por %p56_p5, %p55_p3  ;;  %p113_p10 = scmp.eq.s32.totalorder %s408_s16, 1 }
  0x10   : > { %p734_p9 = por %p107_p6, %p49_p1  ;;  %p447_p13 = scmp.lt.s32.totalorder %s659_s14, 2 }
  0x11   : > { %s908_s21 = scalar_select %p730_p8, 1, 0 }
  0x12   : > { %s909_s22 = scalar_select %p734_p9, 1, 0 }
  0x13   : > { %s739_s23 = scalar_select %p40_p7, %s647_s11, %s42_s18  }
  0x14   : > { %p741_p11 = por %p113_p10, %p55_p3  ;;  %s748_s25 = sand.u32 1, %s647_s11  }
  0x15   : > { %s411_s26 = sshll.u32 %s748_s25, 3  ;;  %s427_s27 = sshll.u32 %s655_s13, 7 }
  0x16   : > { %s910_s24 = scalar_select %p741_p11, 1, 0 }
  0x17   : > { %s755_s30 = scalar_lea.hbm %s902_s0, %s427_s27  ;;  %s137_s3 = scalar_lea.vmem [#allocation3], %s411_s26 }
  0x18   : > { %s145_s4 = sshll.u32 %s137_s3, 4  ;;  %p761_p0 = pnand %p447_p13, %p724_p4  ;;  %s757_s4 = int_to_ptr.vmem [resolvable:$true] %s145_s4 }
  0x19   : > { %s134_s6 = scalar_lea.sflag [#allocation4], %s748_s25  ;;  %s513_s7 = scalar_lea.hbm %s755_s30, 128 }
  0x1a   : > { %p514_p2 = scmp.ne.s32.totalorder %s755_s30, %s513_s7  ;;  %p515_p3 = pneg %p761_p0 }
  0x1b   : > { %s518_s16 = scalar_lea.hbm %s902_s0, 256  ;;  %p519_p4 = scmp.lt.u32.totalorder %s755_s30, %s902_s0 }
  0x1c   : > { %p516_p5 = pnand %p515_p3, %p514_p2  ;;  %p520_p7 = scmp.lt.u32.totalorder %s518_s16, %s513_s7 }
  0x1d   : > { %p522_p13 = scmp.lt.u32.totalorder %s513_s7, %s755_s30 }
  0x1e   : > { %p517_p6 = pneg %p516_p5  ;;  %p521_p10 = por %p520_p7, %p519_p4 }
  0x20   : > { %p523_p12 = por %p522_p13, %p521_p10 }
  0x22   : > { %p524_p1 = pnand %p523_p12, %p517_p6 }
  0x24   : > { %527 = shalt.err (!%p524_p1)
}
  0x25   : > { %s528_s20 = scalar_lea.vmem %s757_s4, 128  ;;  %s661_s26 = smov [#allocation3]  }
  0x26   : > { %p529_p2 = scmp.ne.s32.totalorder %s757_s4, %s528_s20  ;;  %s533_s27 = sshll.u32 %s661_s26, 4  ;;  %s534_s27 = int_to_ptr.vmem [resolvable:$false] %s533_s27 }
  0x27   : > { %s535_s28 = scalar_lea.vmem %s534_s27, 256  ;;  %p536_p9 = scmp.lt.s32.totalorder %s757_s4, %s534_s27 }
  0x28   : > { %p531_p5 = pnand %p529_p2, %p515_p3  ;;  %p537_p4 = scmp.lt.s32.totalorder %s535_s28, %s528_s20 }
  0x2a   : > { %p532_p11 = pneg %p531_p5  ;;  %p538_p7 = por %p537_p4, %p536_p9 }
  0x2c   : > { %p539_p10 = pnand %p538_p7, %p532_p11 }
  0x2e   : > { %542 = shalt.err (!%p539_p10)
}
  0x2f   : > { %s662_s29 = smov 32   ;;  %s663_s3 = smov 2  }
  0x30   : > { %439 = dma.hbm_to_vmem [thread:$0]  (!%p761_p0), %s755_s30, 128, %s757_s4, %s134_s6, %s662_s29, %s662_s29, %s663_s3  }
  0x31   : > { %p172_p12 = scmp.lt.s32.totalorder %s659_s14, 3  ;;  %s414_s7 = sshll.u32 %s748_s25, 1 }
  0x32   : > { %s415_s8 = sshll.u32 %s655_s13, 5  ;;  %p912_p9 = scmp.ge.s32.totalorder %s659_s14, 1 }
  0x33   : > { %s806_s19 = scalar_lea.hbm %s903_s1, %s415_s8  ;;  %s159_s20 = scalar_lea.vmem [#allocation6], %s414_s7 }
  0x34   : > { %p799_p11 = pnand %p912_p9, %p172_p12  ;;  %s167_s26 = sshll.u32 %s159_s20, 4  ;;  %s168_s26 = int_to_ptr.vmem [resolvable:$true] %s167_s26 }
  0x35   : > { %s156_s30 = scalar_lea.sflag [#allocation7], %s748_s25  ;;  %s543_s4 = scalar_lea.hbm %s806_s19, 32 }
  0x36   : > { %s913_s15 = scalar_select %p799_p11, 1, 0 }
  0x37   : > { %p544_p1 = scmp.ne.s32.totalorder %s806_s19, %s543_s4  ;;  %s548_s28 = scalar_lea.hbm %s903_s1, 64 }
  0x38   : > { %p549_p2 = scmp.lt.u32.totalorder %s806_s19, %s903_s1  ;;  %p550_p5 = scmp.lt.u32.totalorder %s548_s28, %s543_s4 }
  0x39   : > { %p546_p6 = pnand %p544_p1, %p515_p3  ;;  %p552_p7 = scmp.lt.u32.totalorder %s543_s4, %s806_s19 }
  0x3a   : > { %p551_p4 = por %p550_p5, %p549_p2 }
  0x3b   : > { %p547_p13 = pneg %p546_p6 }
  0x3c   : > { %p553_p10 = por %p552_p7, %p551_p4 }
  0x3e   : > { %p554_p12 = pnand %p553_p10, %p547_p13 }
  0x40   : > { %557 = shalt.err (!%p554_p12)
}
  0x41   : > { %s558_s25 = scalar_lea.vmem %s168_s26, 32  ;;  %s664_s7 = smov [#allocation6]  }
  0x42   : > { %p559_p9 = scmp.ne.s32.totalorder %s168_s26, %s558_s25  ;;  %s563_s8 = sshll.u32 %s664_s7, 4  ;;  %s564_s8 = int_to_ptr.vmem [resolvable:$false] %s563_s8 }
  0x43   : > { %s565_s16 = scalar_lea.vmem %s564_s8, 64  ;;  %p566_p8 = scmp.lt.s32.totalorder %s168_s26, %s564_s8 }
  0x44   : > { %p561_p1 = pnand %p559_p9, %p515_p3  ;;  %p567_p11 = scmp.lt.s32.totalorder %s565_s16, %s558_s25 }
  0x46   : > { %p562_p6 = pneg %p561_p1  ;;  %p568_p2 = por %p567_p11, %p566_p8 }
  0x48   : > { %p569_p5 = pnand %p568_p2, %p562_p6 }
  0x4a   : > { %572 = shalt.err (!%p569_p5)
}
  0x4b   : > { %442 = dma.hbm_to_vmem [thread:$0]  (!%p761_p0), %s806_s19, 32, %s168_s26, %s156_s30  }
  0x4c   : > { %p914_p13 = scmp.ne.s32.totalorder %s913_s15, 0 }
  0x4d   : > { %s831_s18 = sand.u32 (!%p914_p13), 1, %s643_s10   ;;  %p915_p8 = scmp.ne.s32.totalorder (!%p914_p13), %s908_s21, 0 }
  0x4e   : > { %176 = sbr.rel (%p914_p13) target bundleno = 384 (0x180), region = 28  ;;  %s417_s20 = sshll.u32 (!%p914_p13), %s831_s18, 3 }
  0x4f   : > { %s179_s4 = scalar_lea.sflag (!%p914_p13), [#allocation4], %s831_s18  ;;  %s182_s6 = scalar_lea.vmem (!%p914_p13), [#allocation3], %s417_s20 }
  0x55   : > { %626 = dma.done.wait (%p915_p8), %s179_s4, 128  }
  0x56   : > { %628 = vsyncadd (%p915_p8), %s179_s4, 4294967168  ;;  %s418_s5 = sshll.u32 %s831_s18, 1  ;;  %s188_s15 = scalar_lea.sflag [#allocation7], %s831_s18 }
  0x57   : > { %s191_s19 = scalar_lea.vmem [#allocation6], %s418_s5 }
  0x58   : > { %630 = dma.done.wait (%p915_p8), %s188_s15, 32  }
  0x59   : > { %632 = vsyncadd (%p915_p8), %s188_s15, 4294967264  ;;  %v665_v0 = vmov 0.0   ;;  %v223_v1 = vld [vmem:[%s182_s6] sm:$0x3]  ;;  %v420_v2 = vld [vmem:[%s182_s6 + $0x2] sm:$0x3] }
  0x5a   : > { %221 = vst [vmem:[#allocation2] sm:$0x3] %v665_v0  ;;  %v226_v3 = vmax.f32 %v223_v1, %v420_v2  ;;  %v421_v4 = vld [vmem:[%s182_s6 + $0x4] sm:$0x3]  ;;  %v422_v5 = vld [vmem:[%s182_s6 + $0x6] sm:$0x3] }
  0x5b   : > { %v222_v21 = vld [vmem:[%s191_s19] sm:$0x3]  ;;  %v666_v32 = vmov 0.1   ;;  %vm276_vm4 = vcmask 1041408   ;;  %s216_s21 = scalar_lea.vmem [#allocation8], %s417_s20 }
  0x5c   : > { %v229_v6 = vmax.f32 %v226_v3, %v421_v4  ;;  %vm236_vm0 = vcmp.eq.s32.totalorder %v222_v21, 0  ;;  %vm242_vm1 = vcmp.eq.s32.totalorder %v222_v21, 1  ;;  %vm248_vm2 = vcmp.eq.s32.totalorder %v222_v21, 2  ;;  %s303_s26 = sshll.u32 %s216_s21, 4  ;;  %s424_s30 = sshll.u32 %s651_s12, 7  ;;  %s850_s26 = int_to_ptr.vmem [resolvable:$true] %s303_s26 }
  0x5d   : > { %vm254_vm3 = vcmp.eq.s32.totalorder %v222_v21, 3  ;;  %v261_v33 = vsel %vm242_vm1, 0.2, %v666_v32  ;;  %s855_s3 = scalar_lea.hbm %s904_s2, %s424_s30  ;;  %s290_s25 = scalar_lea.sflag [#allocation5], %s831_s18 }
  0x5e   : > { %v232_v7 = vmax.f32 %v229_v6, %v422_v5  ;;  %v262_v34 = vsel %vm248_vm2, 0.3, %v261_v33  ;;  %s573_s7 = scalar_lea.vmem %s850_s26, 128  ;;  %p916_p3 = scmp.ne.s32.totalorder %s909_s22, 0 }
  0x5f   : > { %v263_v36 = vsel %vm254_vm3, 0.4, %v262_v34  ;;  %p574_p0 = scmp.ne.s32.totalorder %s850_s26, %s573_s7  ;;  %s667_s12 = smov [#allocation8]  }
  0x60   : > { %v233_v8 = vsub.f32 %v223_v1, %v232_v7  ;;  %v238_v9 = vsub.f32 %v420_v2, %v232_v7  ;;  %v244_v10 = vsub.f32 %v421_v4, %v232_v7  ;;  %v250_v11 = vsub.f32 %v422_v5, %v232_v7  ;;  %s577_s8 = sshll.u32 %s667_s12, 4  ;;  %s578_s8 = int_to_ptr.vmem [resolvable:$false] %s577_s8 }
  0x61   : > { %v269_v41 = vld [vmem:[#allocation2] sm:$0x3]  ;;  %p575_p11 = pnand %p574_p0, %p916_p3  ;;  %s579_s16 = scalar_lea.vmem %s578_s8, 256 }
  0x62   : > { %v234_v12 = vmul.f32 1.442695, %v233_v8  ;;  %v239_v13 = vmul.f32 1.442695, %v238_v9  ;;  %v245_v14 = vmul.f32 1.442695, %v244_v10  ;;  %p580_p7 = scmp.lt.s32.totalorder %s850_s26, %s578_s8  ;;  %p581_p10 = scmp.lt.s32.totalorder %s579_s16, %s573_s7 }
  0x63   : > { %v251_v15 = vmul.f32 1.442695, %v250_v11  ;;  %v237_v24 = vsel %vm236_vm0, %v233_v8, 0.0  ;;  %p576_p4 = pneg %p575_p11 }
  0x64   : > { %501 = vpow2.f32 %v234_v12  ;;  %v243_v25 = vsel %vm242_vm1, %v238_v9, %v237_v24  ;;  %p582_p12 = por %p581_p10, %p580_p7 }
  0x65   : > { %503 = vpow2.f32 %v239_v13  ;;  %v249_v26 = vsel %vm248_vm2, %v244_v10, %v243_v25 }
  0x66   : > { %505 = vpow2.f32 %v245_v14  ;;  %v255_v28 = vsel %vm254_vm3, %v250_v11, %v249_v26  ;;  %p583_p9 = pnand %p582_p12, %p576_p4 }
  0x67   : > { %507 = vpow2.f32 %v251_v15 }
  0x6e   : > { %v502_v16 = vpop.eup %501 }
  0x6f   : > { %v504_v17 = vpop.eup %503 }
  0x70   : > { %v506_v18 = vpop.eup %505  ;;  %v241_v19 = vadd.f32 %v504_v17, %v502_v16 }
  0x71   : > { %v508_v20 = vpop.eup %507 }
  0x72   : > { %v247_v22 = vadd.f32 %v506_v18, %v241_v19 }
  0x74   : > { %v253_v23 = vadd.f32 %v508_v20, %v247_v22 }
  0x76   : > { %509 = vlog2.f32 %v253_v23 }
  0x80   : > { %v510_v27 = vpop.eup %509 }
  0x81   : > { %v257_v29 = vmul.f32 0.6931472, %v510_v27 }
  0x83   : > { %v258_v30 = vsub.f32 %v255_v28, %v257_v29 }
  0x85   : > { %v259_v31 = vmul.f32 1.442695, %v258_v30  ;;  %v264_v38 = vmul.f32 %v263_v36, %v258_v30 }
  0x87   : > { %511 = vpow2.f32 %v259_v31 }
  0x91   : > { %v512_v35 = vpop.eup %511 }
  0x92   : > { %v265_v37 = vsub.f32 1.0, %v512_v35 }
  0x94   : > { %v266_v39 = vmul.f32 %v265_v37, %v265_v37 }
  0x96   : > { %v267_v40 = vsub.f32 0.0, %v266_v39 }
  0x98   : > { %v268_v42 = vmul.f32 %v267_v40, %v264_v38 }
  0x9a   : > { %v270_v43 = vadd.f32 %v269_v41, %v268_v42 }
  0x9c   : > { %271 = vst [vmem:[#allocation2] sm:$0x3] %v270_v43 }
  0xa3   : > { %v275_v44 = vld [vmem:[#allocation2] sm:$0x3] }
  0xa4   : > { %v277_v45 = vsel %vm276_vm4, %v275_v44, 0.0 }
  0xa5   : > { %278 = vadd.xlane.f32.xlu0 %v277_v45 }
 0x132   : > { %v279_v46 = vpop.xlane.xlu0 %278 }
 0x133   : > { %v280_v47 = vrot.slane %v279_v46, 4 }
 0x135   : > { %v281_v48 = vadd.f32 %v280_v47, %v279_v46 }
 0x137   : > { %v282_v49 = vrot.slane %v281_v48, 2 }
 0x139   : > { %v283_v50 = vadd.f32 %v282_v49, %v281_v48 }
 0x13b   : > { %v284_v51 = vrot.slane %v283_v50, 1 }
 0x13d   : > { %v285_v52 = vadd.f32 %v284_v51, %v283_v50 }
 0x13f   : > { %428 = vpush %v285_v52 }
 0x170   : > { %s429_s27 = spop %428 }
 0x171   : > { %v287_v53 = vstv %s429_s27 }
 0x172   : > { %288 = vst [vmem:[%s216_s21] sm:$0xff] %v287_v53 }
 0x173   : > { %586 = shalt.err (!%p583_p9)
}
 0x174   : > { %s587_s18 = scalar_lea.hbm %s855_s3, 128  ;;  %s591_s6 = scalar_lea.hbm %s904_s2, 256 }
 0x175   : > { %p588_p1 = scmp.ne.s32.totalorder %s855_s3, %s587_s18  ;;  %p592_p5 = scmp.lt.u32.totalorder %s855_s3, %s904_s2 }
 0x176   : > { %p593_p13 = scmp.lt.u32.totalorder %s591_s6, %s587_s18  ;;  %p595_p0 = scmp.lt.u32.totalorder %s587_s18, %s855_s3 }
 0x177   : > { %p589_p6 = pnand %p588_p1, %p916_p3 }
 0x178   : > { %p594_p8 = por %p593_p13, %p592_p5 }
 0x179   : > { %p590_p2 = pneg %p589_p6 }
 0x17a   : > { %p596_p11 = por %p595_p0, %p594_p8 }
 0x17c   : > { %p597_p4 = pnand %p596_p11, %p590_p2 }
 0x17e   : > { %600 = shalt.err (!%p597_p4)
}
 0x17f   : > { %434 = dma.vmem_to_hbm [thread:$0]  (%p916_p3), %s850_s26, 128, %s855_s3, %s290_s25  }
 0x180 PF: > { %s315_s19 = sand.u32 1, %s639_s9   ;;  %p917_p7 = scmp.ne.s32.totalorder %s910_s24, 0 }
 0x181   : > { %p918_p10 = scmp.ge.s32.totalorder %s659_s14, 2  ;;  %s316_s21 = scalar_lea.sflag [#allocation5], %s315_s19 }
 0x183   : > { %p444_p12 = pnand %p918_p10, %p917_p7 }
 0x185   : > { %634 = dma.done.wait (!%p444_p12), %s316_s21, 128  }
 0x186   : > { %636 = vsyncadd (!%p444_p12), %s316_s21, 4294967168  ;;  %s21_s14 = sadd.s32 1, %s659_s14   ;;  %s919_s9 = smov %s643_s10 }
 0x187   : > { %p18_p9 = scmp.ge.s32.totalorder %s21_s14, 4   ;;  %s920_s10 = smov %s647_s11 }
 0x188   : > { %s921_s11 = smov %s739_s23  ;;  %s922_s12 = smov %s655_s13 }
 0x189   : > { %s923_s13 = smov %s925_s17  ;;  %20 = sbr.rel (!%p18_p9) target bundleno = 8 (0x8), region = 97 }
 0x190   :  { %321 = vsyncpa [#allocation4], 1 }
 0x191   :  { %323 = vsyncpa [#allocation4 + $0x1], 1 }
 0x192   :  { %324 = vsyncpa [#allocation7], 1 }
 0x193   :  { %326 = vsyncpa [#allocation7 + $0x1], 1 }
 0x194   :  { %327 = vsyncpa [#allocation5], 1 }
 0x195   :  { %329 = vsyncpa [#allocation5 + $0x1], 1 }

</bundles_post_ra>
